<compile_context>
chip_gen: v5e
topology: v5e:2x2
jax: 0.10.0
libtpu: 0.0.40
codegen_flags: <defaults>
</compile_context>

<pallas_src>
import functools

import jax
import jax.numpy as jnp
from jax.experimental import pallas as pl
from jax.experimental.pallas import tpu as pltpu


def _round_up(v, m):
    return (v + m - 1) // m * m


# ----------------------------------------------------------------------------
# Fused Pallas kernel: full FNN forward for one batch tile.
# ----------------------------------------------------------------------------
def _fused_fnn_kernel(*refs, n_layers, d_out, mxu_dtype):
    # refs = (x, w_0..w_{L-1}, b_0..b_{L-1}, out, h_a, h_b)
    x_ref = refs[0]
    w_refs = refs[1:1 + n_layers]
    b_refs = refs[1 + n_layers:1 + 2 * n_layers]
    o_ref = refs[1 + 2 * n_layers]
    h_bufs = refs[1 + 2 * n_layers + 1:]          # ping-pong VMEM activation buffers

    lhs = x_ref[...]                              # (tm, d_in), f32 input tile
    for l in range(n_layers):                     # static (unrolled) layer loop
        # MXU matmul: bf16 (or f32) inputs, always f32 accumulation.
        y = jnp.dot(lhs.astype(mxu_dtype), w_refs[l][...],
                    preferred_element_type=jnp.float32)
        y = y + b_refs[l][...]                    # (1, N_pad) broadcast, f32 VPU
        if l < n_layers - 1:
            n_pad = w_refs[l].shape[1]
            dst = h_bufs[l % 2]
            # tanh in f32 on the EUP; store activations in mxu_dtype (bf16 by
            # default) -> half the vst/vld bytes for the inter-layer round trip.
            dst[:, :n_pad] = jnp.tanh(y).astype(dst.dtype)
            lhs = dst[:, :w_refs[l + 1].shape[0]]
        else:
            # Compact store: only the d_out real lanes go to HBM.
            o_ref[...] = y[:, :d_out].astype(o_ref.dtype)


# ----------------------------------------------------------------------------
# Parameter construction / padding
# ----------------------------------------------------------------------------
def init_fnn_params(layer_sizes, key):
    """Glorot-normal weights, zero biases (matches the PyTorch module's init).
    Weights are stored (in_features, out_features) so forward is x @ W + b."""
    params = []
    for i in range(1, len(layer_sizes)):
        fan_in, fan_out = layer_sizes[i - 1], layer_sizes[i]
        key, sub = jax.random.split(key)
        scale = jnp.sqrt(2.0 / (fan_in + fan_out))
        w = scale * jax.random.normal(sub, (fan_in, fan_out), dtype=jnp.float32)
        b = jnp.zeros((fan_out,), dtype=jnp.float32)
        params.append((w, b))
    return params


def pad_params(params, mxu_dtype=jnp.bfloat16):
    """Zero-pad every layer's output width (and the following layer's input
    width) up to a multiple of 128 so all hidden matmuls / activation stores
    are lane-dense.  Weights are cast once to `mxu_dtype` (bf16 halves HBM /
    VMEM weight bytes); biases stay f32 with shape (1, N_pad).  Zero-padded
    weight columns/biases + tanh(0)=0 keep padded lanes exactly zero."""
    padded = []
    prev_out_pad = None
    for idx, (w, b) in enumerate(params):
        k, n = w.shape
        k_pad = k if idx == 0 else prev_out_pad      # match previous padded out
        n_pad = _round_up(n, 128)
        wp = (jnp.zeros((k_pad, n_pad), jnp.float32)
              .at[:k, :n].set(w).astype(mxu_dtype))
        bp = jnp.zeros((1, n_pad), jnp.float32).at[0, :n].set(b)
        padded.append((wp, bp))
        prev_out_pad = n_pad
    return padded


# ----------------------------------------------------------------------------
# Forward pass (single fused pallas_call, batch-tiled grid)
# ----------------------------------------------------------------------------
def fnn_forward(padded_params, x, *, d_out, tile_m=2048, mxu_dtype=jnp.bfloat16):
    n_layers = len(padded_params)
    m, d_in = x.shape
    hidden_pads = [wp.shape[1] for wp, _ in padded_params[:-1]]
    scratch_w = max(hidden_pads) if hidden_pads else 128

    # --- batch tiling ---------------------------------------------------
    # Round tile_m up to the sublane multiple FIRST (so an odd caller value
    # can never violate the (8,128) rule), then cap at ceil(m/2) rounded up
    # so large batches always give >=2 grid steps (v7x 2-TC split).
    tile_m = max(8, _round_up(tile_m, 8))
    tm = min(tile_m, _round_up((m + 1) // 2, 8))
    tm = max(tm, 8)
    m_pad = _round_up(m, tm)
    if m_pad != m:
        x = jnp.pad(x, ((0, m_pad - m), (0, 0)))     # zero rows, sliced off below

    # --- VMEM budget (derived, v7x-safe) ---------------------------------
    act_bytes = jnp.dtype(mxu_dtype).itemsize
    w_bytes = sum(wp.size * wp.dtype.itemsize + bp.size * bp.dtype.itemsize
                  for wp, bp in padded_params)
    footprint = (2 * tm * d_in * 4                 # x double-buffer (f32)
                 + 2 * tm * d_out * 4              # compact out double-buffer
                 + 2 * tm * scratch_w * act_bytes  # ping-pong activation scratch
                 + 2 * w_bytes)                    # resident (double-buffered) params
    vmem_limit = min(48 * 1024 * 1024,
                     max(32 * 1024 * 1024, int(footprint * 2)))

    kernel = functools.partial(_fused_fnn_kernel,
                               n_layers=n_layers, d_out=d_out,
                               mxu_dtype=mxu_dtype)

    in_specs = [pl.BlockSpec((tm, d_in), lambda i: (i, 0))]      # streamed x tiles
    for wp, _ in padded_params:                                  # weights resident
        in_specs.append(pl.BlockSpec(wp.shape, lambda i: (0, 0)))
    for _, bp in padded_params:                                  # biases resident
        in_specs.append(pl.BlockSpec(bp.shape, lambda i: (0, 0)))

    out = pl.pallas_call(
        kernel,
        out_shape=jax.ShapeDtypeStruct((m_pad, d_out), jnp.float32),
        grid=(m_pad // tm,),
        in_specs=in_specs,
        out_specs=pl.BlockSpec((tm, d_out), lambda i: (i, 0)),   # compact output
        scratch_shapes=[pltpu.VMEM((tm, scratch_w), mxu_dtype),
                        pltpu.VMEM((tm, scratch_w), mxu_dtype)],
        compiler_params=pltpu.CompilerParams(
            dimension_semantics=("parallel",),        # megacore / v7x 2-TC split
            vmem_limit_bytes=vmem_limit,
        ),
    )(x, *[wp for wp, _ in padded_params], *[bp for _, bp in padded_params])

    # Strip only the batch padding (lane dim is already compact).
    return out[:m]


def fnn_forward_ref(params, x):
    """Pure-JAX reference (high-precision matmuls) for correctness checking."""
    n = len(params)
    for i, (w, b) in enumerate(params):
        x = jnp.dot(x, w, precision=jax.lax.Precision.HIGHEST) + b
        if i < n - 1:
            x = jnp.tanh(x)
    return x


# ----------------------------------------------------------------------------
if __name__ == "__main__":
    # deepxde-style FNN: layer_sizes = [4, 32, 32, 2], activation = tanh.
    layer_sizes = [4, 32, 32, 2]
    d_out = layer_sizes[-1]

    key = jax.random.PRNGKey(0)
    key, pkey, xkey1, xkey2 = jax.random.split(key, 4)

    params = init_fnn_params(layer_sizes, pkey)

    # Small batch (single tile) and a larger batch that exercises the grid
    # (tm is capped at ceil(m/2) -> 2 tiles + a few padding rows).  Real PINN
    # runs should sweep tile_m in the 2048-8192 range.
    x_small = jax.random.normal(xkey1, (8, layer_sizes[0]), dtype=jnp.float32)
    x_large = jax.random.normal(xkey2, (300, layer_sizes[0]), dtype=jnp.float32)

    # bf16 MXU path (shipping config on all generations, esp. v5e) and a
    # test-only f32 MXU path (tight tolerance correctness check).
    for mxu_dtype, tol in ((jnp.bfloat16, 6e-2), (jnp.float32, 1e-2)):
        padded = pad_params(params, mxu_dtype=mxu_dtype)
        fwd = jax.jit(functools.partial(
            fnn_forward, d_out=d_out, tile_m=2048, mxu_dtype=mxu_dtype))
        for x in (x_small, x_large):
            out = jax.block_until_ready(fwd(padded, x))
            ref = fnn_forward_ref(params, x)
            assert out.shape == ref.shape
            assert jnp.allclose(out, ref, atol=tol, rtol=tol), (
                "mismatch vs reference (mxu_dtype=%s)" % jnp.dtype(mxu_dtype).name)

    print("KERNEL_OK")
</pallas_src>

<mosaic_0001>
module attributes {stable_mosaic.version = 11 : i64} {
  func.func @_fused_fnn_kernel(%arg0: i32, %arg1: memref<8x4xf32, #tpu.memory_space<vmem>>, %arg2: memref<4x128xbf16, #tpu.memory_space<vmem>>, %arg3: memref<128x128xbf16, #tpu.memory_space<vmem>>, %arg4: memref<128x128xbf16, #tpu.memory_space<vmem>>, %arg5: memref<1x128xf32, #tpu.memory_space<vmem>>, %arg6: memref<1x128xf32, #tpu.memory_space<vmem>>, %arg7: memref<1x128xf32, #tpu.memory_space<vmem>>, %arg8: memref<8x2xf32, #tpu.memory_space<vmem>>, %arg9: memref<8x128xbf16, #tpu.memory_space<vmem>>, %arg10: memref<8x128xbf16, #tpu.memory_space<vmem>>) attributes {dimension_semantics = [#tpu.dimension_semantics<parallel>], iteration_bounds = array<i64: 1>, scalar_prefetch = 0 : i64, scratch_operands = 2 : i64, tpu.core_type = #tpu.core_type<tc>, window_params = [{transform_indices = @transform_0, window_bounds = array<i64: 8, 4>}, {pipeline_mode = #tpu.pipeline_mode<synchronous>, transform_indices = @transform_1, window_bounds = array<i64: 4, 128>}, {pipeline_mode = #tpu.pipeline_mode<synchronous>, transform_indices = @transform_2, window_bounds = array<i64: 128, 128>}, {pipeline_mode = #tpu.pipeline_mode<synchronous>, transform_indices = @transform_3, window_bounds = array<i64: 128, 128>}, {pipeline_mode = #tpu.pipeline_mode<synchronous>, transform_indices = @transform_4, window_bounds = array<i64: 1, 128>}, {pipeline_mode = #tpu.pipeline_mode<synchronous>, transform_indices = @transform_5, window_bounds = array<i64: 1, 128>}, {pipeline_mode = #tpu.pipeline_mode<synchronous>, transform_indices = @transform_6, window_bounds = array<i64: 1, 128>}, {transform_indices = @transform_7, window_bounds = array<i64: 8, 2>}]} {
    %c0 = arith.constant 0 : index
    %c0_0 = arith.constant 0 : index
    %0 = vector.load %arg1[%c0, %c0_0] : memref<8x4xf32, #tpu.memory_space<vmem>>, vector<8x4xf32>
    %1 = arith.truncf %0 : vector<8x4xf32> to vector<8x4xbf16>
    %c0_1 = arith.constant 0 : index
    %c0_2 = arith.constant 0 : index
    %2 = vector.load %arg2[%c0_1, %c0_2] : memref<4x128xbf16, #tpu.memory_space<vmem>>, vector<4x128xbf16>
    %cst = arith.constant dense<0.000000e+00> : vector<8x128xf32>
    %3 = tpu.matmul %1, %2, %cst {dimension_numbers = #tpu.dot_dimension_numbers<[1], [0], [0], [1], [0, 0, 1, 1], [], []>} : vector<8x4xbf16>, vector<4x128xbf16>, vector<8x128xf32> -> vector<8x128xf32>
    %c0_3 = arith.constant 0 : index
    %c0_4 = arith.constant 0 : index
    %4 = vector.load %arg5[%c0_3, %c0_4] : memref<1x128xf32, #tpu.memory_space<vmem>>, vector<1x128xf32>
    %5 = vector.broadcast %4 : vector<1x128xf32> to vector<8x128xf32>
    %6 = arith.addf %3, %5 : vector<8x128xf32>
    %7 = math.tanh %6 : vector<8x128xf32>
    %8 = arith.truncf %7 : vector<8x128xf32> to vector<8x128xbf16>
    %c0_5 = arith.constant 0 : index
    %c0_6 = arith.constant 0 : index
    %9 = vector.load %arg9[%c0_5, %c0_6] : memref<8x128xbf16, #tpu.memory_space<vmem>>, vector<8x128xbf16>
    tpu.vector_store %arg9[%c0_5, %c0_6], %8 {strides = array<i32>} : memref<8x128xbf16, #tpu.memory_space<vmem>>, vector<8x128xbf16>,
    %c0_7 = arith.constant 0 : index
    %c0_8 = arith.constant 0 : index
    %10 = vector.load %arg9[%c0_7, %c0_8] : memref<8x128xbf16, #tpu.memory_space<vmem>>, vector<8x128xbf16>
    %c0_9 = arith.constant 0 : index
    %c0_10 = arith.constant 0 : index
    %11 = vector.load %arg3[%c0_9, %c0_10] : memref<128x128xbf16, #tpu.memory_space<vmem>>, vector<128x128xbf16>
    %cst_11 = arith.constant dense<0.000000e+00> : vector<8x128xf32>
    %12 = tpu.matmul %10, %11, %cst_11 {dimension_numbers = #tpu.dot_dimension_numbers<[1], [0], [0], [1], [0, 0, 1, 1], [], []>} : vector<8x128xbf16>, vector<128x128xbf16>, vector<8x128xf32> -> vector<8x128xf32>
    %c0_12 = arith.constant 0 : index
    %c0_13 = arith.constant 0 : index
    %13 = vector.load %arg6[%c0_12, %c0_13] : memref<1x128xf32, #tpu.memory_space<vmem>>, vector<1x128xf32>
    %14 = vector.broadcast %13 : vector<1x128xf32> to vector<8x128xf32>
    %15 = arith.addf %12, %14 : vector<8x128xf32>
    %16 = math.tanh %15 : vector<8x128xf32>
    %17 = arith.truncf %16 : vector<8x128xf32> to vector<8x128xbf16>
    %c0_14 = arith.constant 0 : index
    %c0_15 = arith.constant 0 : index
    %18 = vector.load %arg10[%c0_14, %c0_15] : memref<8x128xbf16, #tpu.memory_space<vmem>>, vector<8x128xbf16>
    tpu.vector_store %arg10[%c0_14, %c0_15], %17 {strides = array<i32>} : memref<8x128xbf16, #tpu.memory_space<vmem>>, vector<8x128xbf16>,
    %c0_16 = arith.constant 0 : index
    %c0_17 = arith.constant 0 : index
    %19 = vector.load %arg10[%c0_16, %c0_17] : memref<8x128xbf16, #tpu.memory_space<vmem>>, vector<8x128xbf16>
    %c0_18 = arith.constant 0 : index
    %c0_19 = arith.constant 0 : index
    %20 = vector.load %arg4[%c0_18, %c0_19] : memref<128x128xbf16, #tpu.memory_space<vmem>>, vector<128x128xbf16>
    %cst_20 = arith.constant dense<0.000000e+00> : vector<8x128xf32>
    %21 = tpu.matmul %19, %20, %cst_20 {dimension_numbers = #tpu.dot_dimension_numbers<[1], [0], [0], [1], [0, 0, 1, 1], [], []>} : vector<8x128xbf16>, vector<128x128xbf16>, vector<8x128xf32> -> vector<8x128xf32>
    %c0_21 = arith.constant 0 : index
    %c0_22 = arith.constant 0 : index
    %22 = vector.load %arg7[%c0_21, %c0_22] : memref<1x128xf32, #tpu.memory_space<vmem>>, vector<1x128xf32>
    %23 = vector.broadcast %22 : vector<1x128xf32> to vector<8x128xf32>
    %24 = arith.addf %21, %23 : vector<8x128xf32>
    %25 = vector.extract_strided_slice %24 {offsets = [0, 0], sizes = [8, 2], strides = [1, 1]} : vector<8x128xf32> to vector<8x2xf32>
    %c0_23 = arith.constant 0 : index
    %c0_24 = arith.constant 0 : index
    %26 = vector.load %arg8[%c0_23, %c0_24] : memref<8x2xf32, #tpu.memory_space<vmem>>, vector<8x2xf32>
    tpu.vector_store %arg8[%c0_23, %c0_24], %25 {strides = array<i32>} : memref<8x2xf32, #tpu.memory_space<vmem>>, vector<8x2xf32>,
    return
  }
  func.func @transform_0(%arg0: i32) -> (i32, i32) {
    %c0_i32 = arith.constant 0 : i32
    %c0_i32_0 = arith.constant 0 : i32
    return %arg0, %c0_i32 : i32, i32
  }
  func.func @transform_1(%arg0: i32) -> (i32, i32) {
    %c0_i32 = arith.constant 0 : i32
    %c0_i32_0 = arith.constant 0 : i32
    %c0_i32_1 = arith.constant 0 : i32
    return %c0_i32, %c0_i32_0 : i32, i32
  }
  func.func @transform_2(%arg0: i32) -> (i32, i32) {
    %c0_i32 = arith.constant 0 : i32
    %c0_i32_0 = arith.constant 0 : i32
    %c0_i32_1 = arith.constant 0 : i32
    return %c0_i32, %c0_i32_0 : i32, i32
  }
  func.func @transform_3(%arg0: i32) -> (i32, i32) {
    %c0_i32 = arith.constant 0 : i32
    %c0_i32_0 = arith.constant 0 : i32
    %c0_i32_1 = arith.constant 0 : i32
    return %c0_i32, %c0_i32_0 : i32, i32
  }
  func.func @transform_4(%arg0: i32) -> (i32, i32) {
    %c0_i32 = arith.constant 0 : i32
    %c0_i32_0 = arith.constant 0 : i32
    %c0_i32_1 = arith.constant 0 : i32
    return %c0_i32, %c0_i32_0 : i32, i32
  }
  func.func @transform_5(%arg0: i32) -> (i32, i32) {
    %c0_i32 = arith.constant 0 : i32
    %c0_i32_0 = arith.constant 0 : i32
    %c0_i32_1 = arith.constant 0 : i32
    return %c0_i32, %c0_i32_0 : i32, i32
  }
  func.func @transform_6(%arg0: i32) -> (i32, i32) {
    %c0_i32 = arith.constant 0 : i32
    %c0_i32_0 = arith.constant 0 : i32
    %c0_i32_1 = arith.constant 0 : i32
    return %c0_i32, %c0_i32_0 : i32, i32
  }
  func.func @transform_7(%arg0: i32) -> (i32, i32) {
    %c0_i32 = arith.constant 0 : i32
    %c0_i32_0 = arith.constant 0 : i32
    return %arg0, %c0_i32 : i32, i32
  }
}

</mosaic_0001>

<bundles_post_ra>
// kernel: fnn_forward.1
= control target key start
LH: loop header
LB: loop body
LE: loop exit
PB: predicated region body
PF: predicated region fallthrough
CT: control target
= control target key end

     0   :  { %12 = vsyncpa [#allocation5], 0  ;;  %s477_s0 = inlined_call_operand.vmem [shape: f32[8,4], index: 0, kind: input, shape index: {}]   ;;  %s478_s1 = inlined_call_operand.vmem [shape: bf16[4,128], index: 1, kind: input, shape index: {}]   ;;  %s479_s2 = inlined_call_operand.hbm [shape: bf16[128,128], index: 2, kind: input, shape index: {}]   ;;  %s480_s3 = inlined_call_operand.hbm [shape: bf16[128,128], index: 3, kind: input, shape index: {}]   ;;  %s481_s4 = inlined_call_operand.vmem [shape: f32[1,128], index: 4, kind: input, shape index: {}]   ;;  %s482_s5 = inlined_call_operand.vmem [shape: f32[1,128], index: 5, kind: input, shape index: {}]   ;;  %s483_s6 = inlined_call_operand.vmem [shape: f32[1,128], index: 6, kind: input, shape index: {}]   ;;  %s484_s7 = inlined_call_operand.vmem [shape: f32[8,2], index: 7, kind: output, shape index: {}]  }
   0x1   :  { %s22_s26 = sshll.u32 %s479_s2, 4  ;;  %s23_s26 = int_to_ptr.hbm [resolvable:$true] %s22_s26 }
   0x2   :  { %13 = vsyncpa [#allocation7], 0  ;;  %s409_s27 = smov [#allocation4]   ;;  %s35_s8 = sshll.u32 %s480_s3, 4  ;;  %s36_s8 = int_to_ptr.hbm [resolvable:$true] %s35_s8 }
   0x3   :  { %s24_s28 = sshll.u32 %s409_s27, 4  ;;  %s410_s9 = smov 64   ;;  %s25_s28 = int_to_ptr.vmem [resolvable:$true] %s24_s28 }
   0x4   :  { %s411_s10 = smov 4   ;;  %s412_s11 = smov [#allocation6]  }
   0x5   :  { %30 = dma.hbm_to_vmem [thread:$0]  %s23_s26, 1024, %s25_s28, [#allocation5], %s410_s9, %s410_s9, %s411_s10  }
   0x6   :  { %s37_s12 = sshll.u32 %s412_s11, 4  ;;  %s38_s12 = int_to_ptr.vmem [resolvable:$true] %s37_s12 }
   0x7   :  { %43 = dma.hbm_to_vmem [thread:$0]  %s36_s8, 1024, %s38_s12, [#allocation7], %s410_s9, %s410_s9, %s411_s10  }
   0x8   :  { %405 = dma.done.wait [#allocation5], 1024  }
   0x9   :  { %406 = vsyncadd [#allocation5], 4294966272 }
   0xa   :  { %407 = dma.done.wait [#allocation7], 1024  }
   0xb   :  { %408 = vsyncadd [#allocation7], 4294966272  ;;  %vm70_vm0 = vcmask 1041408   ;;  %v61_v0 = vld [vmem:[%s478_s1] sm:$0x3]  ;;  %vm66_vm1 = vcmask 31744  }
   0xc   :  { %v59_v1 = vld [vmem:[%s477_s0] sm:$0xff]  ;;  %v72_v3 = vsel %vm70_vm0, %v61_v0, 0  ;;  %v336_v5 = vld [vmem:[#allocation4 + $0x30] sm:$0xff]  ;;  %v335_v6 = vld [vmem:[#allocation4 + $0x28] sm:$0xff]  ;;  %vm257_vm2 = vcmask 15360  }
   0xd   :  { %v337_v2 = vld [vmem:[#allocation4 + $0x38] sm:$0xff]  ;;  %v60_v4 = vpack.c.bf16 %v59_v1, %v59_v1  ;;  %81 = vmatpush.bf16.msra.mxu0 %v72_v3  ;;  %v334_v7 = vld [vmem:[#allocation4 + $0x20] sm:$0xff]  ;;  %v332_v9 = vld [vmem:[#allocation4 + $0x10] sm:$0xff] }
   0xe   :  { %159 = vmatpush.bf16.msra.mxu1 %v337_v2  ;;  %v333_v8 = vld [vmem:[#allocation4 + $0x18] sm:$0xff]  ;;  %v331_v10 = vld [vmem:[#allocation4 + $0x8] sm:$0xff]  ;;  %v330_v11 = vld [vmem:[#allocation4] sm:$0xff] }
   0xf   :  { %v345_v12 = vld [vmem:[#allocation6 + $0x38] sm:$0xff]  ;;  %v344_v13 = vld [vmem:[#allocation6 + $0x30] sm:$0xff]  ;;  %v343_v14 = vld [vmem:[#allocation6 + $0x28] sm:$0xff] }
  0x10   :  { %265 = vmatmul.msk.bf16.vlgmr.msra.gmra.mxu0 %vm66_vm1, %v60_v4  ;;  %244 = vmatpush.bf16.msra.mxu2 %v345_v12  ;;  %v350_v15 = vld [vmem:[%s481_s4] ss:$0 sm:$0xff]  ;;  %v342_v22 = vld [vmem:[#allocation6 + $0x20] sm:$0xff]  ;;  %v340_v24 = vld [vmem:[#allocation6 + $0x10] sm:$0xff] }
  0x11   :  { %v341_v23 = vld [vmem:[#allocation6 + $0x18] sm:$0xff]  ;;  %v339_v25 = vld [vmem:[#allocation6 + $0x8] sm:$0xff]  ;;  %v338_v26 = vld [vmem:[#allocation6] sm:$0xff] }
  0x12   :  { %160 = vmatpush.bf16.msra.mxu1 %v336_v5  ;;  %v351_v27 = vld [vmem:[%s482_s5] ss:$0 sm:$0xff] }
  0x13   :  { %v352_v34 = vld [vmem:[%s483_s6] ss:$0 sm:$0xff] }
  0x14   :  { %245 = vmatpush.bf16.msra.mxu2 %v344_v13 }
  0x16   :  { %161 = vmatpush.bf16.msra.mxu1 %v335_v6 }
  0x18   :  { %246 = vmatpush.bf16.msra.mxu2 %v343_v14 }
  0x1a   :  { %162 = vmatpush.bf16.msra.mxu1 %v334_v7 }
  0x1c   :  { %247 = vmatpush.bf16.msra.mxu2 %v342_v22 }
  0x1e   :  { %163 = vmatpush.bf16.msra.mxu1 %v333_v8 }
  0x20   :  { %248 = vmatpush.bf16.msra.mxu2 %v341_v23 }
  0x22   :  { %164 = vmatpush.bf16.msra.mxu1 %v332_v9 }
  0x24   :  { %249 = vmatpush.bf16.msra.mxu2 %v340_v24 }
  0x26   :  { %165 = vmatpush.bf16.msra.mxu1 %v331_v10 }
  0x28   :  { %250 = vmatpush.bf16.msra.mxu2 %v339_v25 }
  0x2a   :  { %166 = vmatpush.bf16.msra.mxu1 %v330_v11 }
  0x2c   :  { %251 = vmatpush.bf16.msra.mxu2 %v338_v26 }
  0x8d   :  { %v83_v16 = vpop.f32.mrf.mxu0 }
  0x8e   :  { %v84_v17 = vadd.f32 %v350_v15, %v83_v16 }
  0x90   :  { %353 = vtanh.f32 %v84_v17 }
  0x95   :  { %v85_v18 = vpop.f32.mrf.mxu0 }
  0x96   :  { %v354_v19 = vpop.eup %353 }
  0x97   :  { %v88_v20 = vpack.c.bf16 %v354_v19, %v354_v19 }
  0x99   :  { %89 = vst [vmem:[#allocation2] sm:$0xf] %v88_v20 }
  0xa0   :  { %v90_v21 = vld [vmem:[#allocation2] sm:$0xf] }
  0xa1   :  { %167 = vmatmul.bf16.vlgmr.msra.gmra.mxu1 %v90_v21 }
 0x11e   :  { %v168_v28 = vpop.f32.mrf.mxu1 }
 0x11f   :  { %v169_v29 = vadd.f32 %v351_v27, %v168_v28 }
 0x121   :  { %355 = vtanh.f32 %v169_v29 }
 0x126   :  { %v170_v30 = vpop.f32.mrf.mxu1 }
 0x127   :  { %v356_v31 = vpop.eup %355 }
 0x128   :  { %v173_v32 = vpack.c.bf16 %v356_v31, %v356_v31 }
 0x12a   :  { %174 = vst [vmem:[#allocation3] sm:$0xf] %v173_v32 }
 0x131   :  { %v175_v33 = vld [vmem:[#allocation3] sm:$0xf] }
 0x132   :  { %252 = vmatmul.bf16.vlgmr.msra.gmra.mxu2 %v175_v33 }
 0x1b5   :  { %v253_v35 = vpop.f32.mrf.mxu2 }
 0x1b6   :  { %v254_v36 = vadd.f32 %v352_v34, %v253_v35 }
 0x1b8   :  { %258 = vst.msk [vmem:[%s484_s7] sm:$0xff] %vm257_vm2, %v254_v36 }
 0x1bd   :  { %v255_v37 = vpop.f32.mrf.mxu2 }
 0x1be   :  { %263 = vsyncpa [#allocation5], 1 }
 0x1bf   :  { %264 = vsyncpa [#allocation7], 1 }

</bundles_post_ra>
